<compile_context>
chip_gen: v7x
topology: tpu7x:2x2x1
jax: 0.10.0
libtpu: 0.0.40
codegen_flags: <defaults>
</compile_context>

<pallas_src>
import jax
import jax.numpy as jnp
from jax.experimental import pallas as pl
from jax.experimental.pallas import tpu as pltpu

_LANES = 128  # lane width of one vreg; hidden/action dims are padded to this


def _round_up(n, m):
    return ((n + m - 1) // m) * m


def _mlp_kernel(x_ref, w_ref, b_ref, o_ref):
    """x_ref: (TILE_B, S_pad) f32, w_ref: (S_pad+256, 128) bf16,
    b_ref: (8, 128) f32, o_ref: (TILE_B, 128) f32 (lane-padded Q-values)."""
    s_pad = x_ref.shape[1]
    lanes = w_ref.shape[1]  # 128

    # In-kernel f32 -> bf16 cast (VPU) instead of a separate XLA pre-pass.
    x = x_ref[...].astype(jnp.bfloat16)               # (TB, S_pad) bf16
    w1 = w_ref[0:s_pad, :]                            # (S_pad, 128) bf16 (cols >= 40 are 0)
    w2 = w_ref[s_pad:s_pad + lanes, :]                # (128, 128)  bf16 (rows>=40 / cols>=20 are 0)
    w3 = w_ref[s_pad + lanes:s_pad + 2 * lanes, :]    # (128, 128)  bf16 (rows>=20 / cols>=A are 0)
    b1 = b_ref[0:1, :]                                # (1, 128) f32 (zero-padded)
    b2 = b_ref[1:2, :]
    b3 = b_ref[2:3, :]

    # Layer 1: bf16 MXU matmul, f32 accumulate, f32 epilogue.
    h1 = jnp.dot(x, w1, preferred_element_type=jnp.float32) + b1
    h1 = jnp.maximum(h1, 0.0)                         # lanes >= 40 stay exactly 0
    # Layer 2
    h2 = jnp.dot(h1.astype(jnp.bfloat16), w2, preferred_element_type=jnp.float32) + b2
    h2 = jnp.maximum(h2, 0.0)                         # lanes >= 20 stay exactly 0
    # Layer 3 -- full 128-lane result, stored lane-dense (unmasked vst).
    q = jnp.dot(h2.astype(jnp.bfloat16), w3, preferred_element_type=jnp.float32) + b3

    o_ref[...] = q.astype(o_ref.dtype)


def pack_params(params):
    """One-time packing of the 6 parameter tensors into 2 lane-aligned slabs."""
    w1, b1 = params["w1"], params["b1"]   # (S, 40), (40,)
    w2, b2 = params["w2"], params["b2"]   # (40, 20), (20,)
    w3, b3 = params["w3"], params["b3"]   # (20, A), (A,)
    n_states = w1.shape[0]
    n_actions = w3.shape[1]
    assert n_actions <= _LANES and w1.shape[1] <= _LANES and w2.shape[1] <= _LANES
    assert w2.shape[0] == w1.shape[1] and w3.shape[0] == w2.shape[1]

    s_pad = _round_up(max(n_states, 1), 16)   # bf16 sublane-group alignment for slab slicing

    def pad2(w, rows):
        out = jnp.zeros((rows, _LANES), jnp.float32)
        return out.at[: w.shape[0], : w.shape[1]].set(w.astype(jnp.float32))

    w_slab = jnp.concatenate(
        [pad2(w1, s_pad), pad2(w2, _LANES), pad2(w3, _LANES)], axis=0
    ).astype(jnp.bfloat16)                    # (s_pad + 256, 128) bf16

    b_slab = jnp.zeros((8, _LANES), jnp.float32)
    b_slab = b_slab.at[0, : b1.shape[0]].set(b1)
    b_slab = b_slab.at[1, : b2.shape[0]].set(b2)
    b_slab = b_slab.at[2, : b3.shape[0]].set(b3)
    # The zero-padding math relies on every bias-slab entry beyond the three
    # real bias rows (and beyond each layer's true width) staying exactly zero.
    assert bool(jnp.all(b_slab[3:] == 0.0))
    assert bool(jnp.all(b_slab[0, b1.shape[0]:] == 0.0))
    assert bool(jnp.all(b_slab[1, b2.shape[0]:] == 0.0))
    assert bool(jnp.all(b_slab[2, b3.shape[0]:] == 0.0))

    return {
        "w_slab": w_slab,
        "b_slab": b_slab,
        "s_pad": s_pad,
        "n_states": n_states,
        "n_actions": n_actions,
    }


def _choose_tile_b(b, tile_b_req):
    """Batch tile: big (amortize ~0.35us/step), f32-sublane aligned, and split
    into >=2 parallel grid steps on large batches so v7x's 2 TCs both work."""
    b_ceil = _round_up(b, 8)                      # f32 sublane granularity
    tile_b = min(_round_up(tile_b_req, 8), b_ceil)
    if b_ceil >= 1024 and tile_b >= b_ceil:
        # Don't let one big tile swallow a large batch: force a 2-way split so
        # dimension_semantics=("parallel",) can shard across v7x's TensorCores.
        tile_b = _round_up(pl.cdiv(b_ceil, 2), 8)
    return tile_b


def deep_q_table_forward(x, packed, tile_b=2048):
    """Runs the DeepQTable MLP forward pass.

    x: (B, S) float32;  packed: output of pack_params.
    returns: (B, A) float32 Q-values.
    """
    s = packed["n_states"]
    s_pad = packed["s_pad"]
    a = packed["n_actions"]
    w_slab = packed["w_slab"]
    b_slab = packed["b_slab"]

    b = x.shape[0]
    assert x.shape[1] == s
    tile_b = _choose_tile_b(b, tile_b)
    b_pad = _round_up(b, tile_b)

    # Only pad when actually needed (no extra XLA pass in the aligned case).
    pad_rows = b_pad - b
    pad_cols = s_pad - s
    x_in = jnp.pad(x, ((0, pad_rows), (0, pad_cols))) if (pad_rows or pad_cols) else x

    w_rows = w_slab.shape[0]
    grid = (b_pad // tile_b,)

    out = pl.pallas_call(
        _mlp_kernel,
        # Lane-dense output: A padded to 128 lanes; wrapper slices [:b, :a].
        out_shape=jax.ShapeDtypeStruct((b_pad, _LANES), jnp.float32),
        grid=grid,
        in_specs=[
            pl.BlockSpec((tile_b, s_pad), lambda i: (i, 0)),   # x tile (f32), pipelined
            # Invariant operands: constant index_map -> fetched once across the
            # grid.  (pl.Buffered(1) would also drop the redundant 2nd buffer,
            # ~70 KiB; skipped to keep lowering maximally portable.)
            pl.BlockSpec((w_rows, _LANES), lambda i: (0, 0)),  # whole weight slab (one DMA)
            pl.BlockSpec((8, _LANES), lambda i: (0, 0)),       # whole bias slab
        ],
        out_specs=pl.BlockSpec((tile_b, _LANES), lambda i: (i, 0)),  # 128-wide unmasked stores
        compiler_params=pltpu.CompilerParams(
            dimension_semantics=("parallel",)  # shards batch grid across v7x's 2 TCs
        ),
    )(x_in, w_slab, b_slab)

    return out[:b, :a]


def _init_linear(key, fan_in, fan_out):
    """Mimics torch.nn.Linear init: uniform(-1/sqrt(fan_in), 1/sqrt(fan_in))."""
    k_w, k_b = jax.random.split(key)
    bound = 1.0 / jnp.sqrt(jnp.float32(fan_in))
    w = jax.random.uniform(k_w, (fan_in, fan_out), jnp.float32, -bound, bound)
    b = jax.random.uniform(k_b, (fan_out,), jnp.float32, -bound, bound)
    return w, b


def make_params(number_of_states, number_of_actions, key):
    k1, k2, k3 = jax.random.split(key, 3)
    w1, b1 = _init_linear(k1, number_of_states, 40)
    w2, b2 = _init_linear(k2, 40, 20)
    w3, b3 = _init_linear(k3, 20, number_of_actions)
    return {"w1": w1, "b1": b1, "w2": w2, "b2": b2, "w3": w3, "b3": b3}


def reference_forward_f32(x, p):
    h1 = jnp.maximum(x @ p["w1"] + p["b1"], 0.0)
    h2 = jnp.maximum(h1 @ p["w2"] + p["b2"], 0.0)
    return h2 @ p["w3"] + p["b3"]


def reference_forward_bf16(x, p):
    """Mirrors the kernel's mixed precision (bf16 operands, f32 accumulate/epilogue)."""
    bf = jnp.bfloat16
    h1 = jnp.dot(x.astype(bf), p["w1"].astype(bf), preferred_element_type=jnp.float32) + p["b1"]
    h1 = jnp.maximum(h1, 0.0)
    h2 = jnp.dot(h1.astype(bf), p["w2"].astype(bf), preferred_element_type=jnp.float32) + p["b2"]
    h2 = jnp.maximum(h2, 0.0)
    return jnp.dot(h2.astype(bf), p["w3"].astype(bf), preferred_element_type=jnp.float32) + p["b3"]


if __name__ == "__main__":
    number_of_states = 16
    number_of_actions = 4
    batch = 8

    key = jax.random.PRNGKey(0)
    k_params, k_x = jax.random.split(key)

    params = make_params(number_of_states, number_of_actions, k_params)
    packed = pack_params(params)  # done once, reused for every forward call
    x = jax.random.normal(k_x, (batch, number_of_states), jnp.float32)

    out = jax.block_until_ready(deep_q_table_forward(x, packed))
    assert out.shape == (batch, number_of_actions)

    # Check against a reference that mirrors the kernel's bf16/f32 precision.
    # (bf16 carries ~3 significant digits, so keep a few-milli tolerance.)
    ref_bf16 = jax.block_until_ready(reference_forward_bf16(x, params))
    assert jnp.allclose(out, ref_bf16, atol=2e-3, rtol=2e-3), "mismatch vs bf16-mirrored reference"

    # Loose sanity check against the full-f32 PyTorch-equivalent forward.
    # TODO(synk): if exact argmax parity with the f32 torch module is required,
    # pack the weight slab as f32 (DMA bytes are negligible at this size).
    ref_f32 = jax.block_until_ready(reference_forward_f32(x, params))
    assert float(jnp.max(jnp.abs(out - ref_f32))) < 0.25, "too far from f32 reference"

    print("KERNEL_OK")
</pallas_src>

<mosaic_0001>
module attributes {stable_mosaic.version = 11 : i64} {
  func.func @_mlp_kernel(%arg0: i32, %arg1: memref<8x16xf32, #tpu.memory_space<vmem>>, %arg2: memref<272x128xbf16, #tpu.memory_space<vmem>>, %arg3: memref<8x128xf32, #tpu.memory_space<vmem>>, %arg4: memref<8x128xf32, #tpu.memory_space<vmem>>) attributes {dimension_semantics = [#tpu.dimension_semantics<parallel>], iteration_bounds = array<i64: 1>, scalar_prefetch = 0 : i64, scratch_operands = 0 : i64, tpu.core_type = #tpu.core_type<tc>, window_params = [{transform_indices = @transform_0, window_bounds = array<i64: 8, 16>}, {pipeline_mode = #tpu.pipeline_mode<synchronous>, transform_indices = @transform_1, window_bounds = array<i64: 272, 128>}, {pipeline_mode = #tpu.pipeline_mode<synchronous>, transform_indices = @transform_2, window_bounds = array<i64: 8, 128>}, {transform_indices = @transform_3, window_bounds = array<i64: 8, 128>}]} {
    %c0 = arith.constant 0 : index
    %c0_0 = arith.constant 0 : index
    %0 = vector.load %arg1[%c0, %c0_0] : memref<8x16xf32, #tpu.memory_space<vmem>>, vector<8x16xf32>
    %1 = arith.truncf %0 : vector<8x16xf32> to vector<8x16xbf16>
    %c0_1 = arith.constant 0 : index
    %c0_2 = arith.constant 0 : index
    %2 = vector.load %arg2[%c0_1, %c0_2] : memref<272x128xbf16, #tpu.memory_space<vmem>>, vector<16x128xbf16>
    %c16 = arith.constant 16 : index
    %c0_3 = arith.constant 0 : index
    %3 = vector.load %arg2[%c16, %c0_3] : memref<272x128xbf16, #tpu.memory_space<vmem>>, vector<128x128xbf16>
    %c144 = arith.constant 144 : index
    %c0_4 = arith.constant 0 : index
    %4 = vector.load %arg2[%c144, %c0_4] : memref<272x128xbf16, #tpu.memory_space<vmem>>, vector<128x128xbf16>
    %c0_5 = arith.constant 0 : index
    %c0_6 = arith.constant 0 : index
    %5 = vector.load %arg3[%c0_5, %c0_6] : memref<8x128xf32, #tpu.memory_space<vmem>>, vector<1x128xf32>
    %c1 = arith.constant 1 : index
    %c0_7 = arith.constant 0 : index
    %6 = vector.load %arg3[%c1, %c0_7] : memref<8x128xf32, #tpu.memory_space<vmem>>, vector<1x128xf32>
    %c2 = arith.constant 2 : index
    %c0_8 = arith.constant 0 : index
    %7 = vector.load %arg3[%c2, %c0_8] : memref<8x128xf32, #tpu.memory_space<vmem>>, vector<1x128xf32>
    %cst = arith.constant dense<0.000000e+00> : vector<8x128xf32>
    %8 = tpu.matmul %1, %2, %cst {dimension_numbers = #tpu.dot_dimension_numbers<[1], [0], [0], [1], [0, 0, 1, 1], [], []>} : vector<8x16xbf16>, vector<16x128xbf16>, vector<8x128xf32> -> vector<8x128xf32>
    %9 = vector.broadcast %5 : vector<1x128xf32> to vector<8x128xf32>
    %10 = arith.addf %8, %9 : vector<8x128xf32>
    %cst_9 = arith.constant 0.000000e+00 : f32
    %11 = vector.broadcast %cst_9 : f32 to vector<8x128xf32>
    %12 = arith.maximumf %10, %11 : vector<8x128xf32>
    %13 = arith.truncf %12 : vector<8x128xf32> to vector<8x128xbf16>
    %cst_10 = arith.constant dense<0.000000e+00> : vector<8x128xf32>
    %14 = tpu.matmul %13, %3, %cst_10 {dimension_numbers = #tpu.dot_dimension_numbers<[1], [0], [0], [1], [0, 0, 1, 1], [], []>} : vector<8x128xbf16>, vector<128x128xbf16>, vector<8x128xf32> -> vector<8x128xf32>
    %15 = vector.broadcast %6 : vector<1x128xf32> to vector<8x128xf32>
    %16 = arith.addf %14, %15 : vector<8x128xf32>
    %cst_11 = arith.constant 0.000000e+00 : f32
    %17 = vector.broadcast %cst_11 : f32 to vector<8x128xf32>
    %18 = arith.maximumf %16, %17 : vector<8x128xf32>
    %19 = arith.truncf %18 : vector<8x128xf32> to vector<8x128xbf16>
    %cst_12 = arith.constant dense<0.000000e+00> : vector<8x128xf32>
    %20 = tpu.matmul %19, %4, %cst_12 {dimension_numbers = #tpu.dot_dimension_numbers<[1], [0], [0], [1], [0, 0, 1, 1], [], []>} : vector<8x128xbf16>, vector<128x128xbf16>, vector<8x128xf32> -> vector<8x128xf32>
    %21 = vector.broadcast %7 : vector<1x128xf32> to vector<8x128xf32>
    %22 = arith.addf %20, %21 : vector<8x128xf32>
    %c0_13 = arith.constant 0 : index
    %c0_14 = arith.constant 0 : index
    %23 = vector.load %arg4[%c0_13, %c0_14] : memref<8x128xf32, #tpu.memory_space<vmem>>, vector<8x128xf32>
    tpu.vector_store %arg4[%c0_13, %c0_14], %22 {strides = array<i32>} : memref<8x128xf32, #tpu.memory_space<vmem>>, vector<8x128xf32>,
    return
  }
  func.func @transform_0(%arg0: i32) -> (i32, i32) {
    %c0_i32 = arith.constant 0 : i32
    %c0_i32_0 = arith.constant 0 : i32
    return %arg0, %c0_i32 : i32, i32
  }
  func.func @transform_1(%arg0: i32) -> (i32, i32) {
    %c0_i32 = arith.constant 0 : i32
    %c0_i32_0 = arith.constant 0 : i32
    %c0_i32_1 = arith.constant 0 : i32
    return %c0_i32, %c0_i32_0 : i32, i32
  }
  func.func @transform_2(%arg0: i32) -> (i32, i32) {
    %c0_i32 = arith.constant 0 : i32
    %c0_i32_0 = arith.constant 0 : i32
    %c0_i32_1 = arith.constant 0 : i32
    return %c0_i32, %c0_i32_0 : i32, i32
  }
  func.func @transform_3(%arg0: i32) -> (i32, i32) {
    %c0_i32 = arith.constant 0 : i32
    %c0_i32_0 = arith.constant 0 : i32
    return %arg0, %c0_i32 : i32, i32
  }
}

</mosaic_0001>

<bundles_post_ra>
// kernel: tpu_custom_call.1
= control target key start
LH: loop header
LB: loop body
LE: loop exit
PB: predicated region body
PF: predicated region fallthrough
CT: control target
= control target key end

     0   :  { %8 = vsyncpa [#allocation3], 0  ;;  %s653_s0 = inlined_call_operand.hbm [shape: f32[8,16], index: 0, kind: input, shape index: {}]   ;;  %s654_s1 = inlined_call_operand.hbm [shape: bf16[272,128], index: 1, kind: input, shape index: {}]   ;;  %s655_s2 = inlined_call_operand.hbm [shape: f32[8,128], index: 2, kind: input, shape index: {}]   ;;  %s656_s3 = inlined_call_operand.hbm [shape: f32[8,128], index: 3, kind: output, shape index: {}]  }
   0x1   :  { %9 = vsyncpa [#allocation6], 0 }
   0x2   :  { %10 = vsyncpa [#allocation4], 0  ;;  %s557_s12 = smov [#allocation5]   ;;  %s463_s16 = scalar_lea.hbm %s654_s1, 2176 }
   0x3   :  { %s26_s13 = sshll.u32 %s557_s12, 4  ;;  %p464_p0 = scmp.ne.s32.totalorder %s654_s1, %s463_s16  ;;  %s27_s13 = int_to_ptr.vmem [resolvable:$true] %s26_s13 }
   0x4   :  { %p467_p1 = scmp.lt.u32.totalorder %s463_s16, %s654_s1 }
   0x6   :  { %p469_p2 = pnand %p467_p1, %p464_p0 }
   0x8   :  { %472 = shalt.err (!%p469_p2)
}
   0x9   :  { %s473_s21 = scalar_lea.vmem %s27_s13, 2176  ;;  %p478_p4 = scmp.lt.s32.totalorder %s27_s13, %s27_s13 }
   0xa   :  { %p474_p3 = scmp.ne.s32.totalorder %s27_s13, %s473_s21  ;;  %p479_p5 = scmp.lt.s32.totalorder %s473_s21, %s473_s21 }
   0xc   :  { %p480_p6 = por %p479_p5, %p478_p4 }
   0xe   :  { %p481_p7 = pnand %p480_p6, %p474_p3 }
  0x10   :  { %484 = shalt.err (!%p481_p7)
}
  0x11   :  { %s558_s22 = smov 64   ;;  %s559_s23 = smov 4  }
  0x12   :  { %32 = dma.hbm_to_vmem [thread:$0]  %s654_s1, 2176, %s27_s13, [#allocation6], %s558_s22, %s558_s22, %s559_s23  }
  0x13   :  { %s560_s26 = smov [#allocation2]   ;;  %s561_s28 = smov [#allocation7]  }
  0x14   :  { %s17_s27 = sshll.u32 %s560_s26, 4  ;;  %s39_s29 = sshll.u32 %s561_s28, 4  ;;  %s18_s27 = int_to_ptr.vmem [resolvable:$true] %s17_s27  ;;  %s40_s29 = int_to_ptr.vmem [resolvable:$true] %s39_s29 }
  0x15   :  { %s485_s5 = scalar_lea.hbm %s653_s0, 128 }
  0x16   :  { %p486_p8 = scmp.ne.s32.totalorder %s653_s0, %s485_s5  ;;  %p489_p9 = scmp.lt.u32.totalorder %s485_s5, %s653_s0 }
  0x18   :  { %p491_p10 = pnand %p489_p9, %p486_p8 }
  0x1a   :  { %494 = shalt.err (!%p491_p10)
}
  0x1b   :  { %s495_s1 = scalar_lea.vmem %s18_s27, 128  ;;  %p500_p12 = scmp.lt.s32.totalorder %s18_s27, %s18_s27 }
  0x1c   :  { %p496_p11 = scmp.ne.s32.totalorder %s18_s27, %s495_s1  ;;  %p501_p13 = scmp.lt.s32.totalorder %s495_s1, %s495_s1 }
  0x1e   :  { %p502_p0 = por %p501_p13, %p500_p12 }
  0x20   :  { %p503_p1 = pnand %p502_p0, %p496_p11 }
  0x22   :  { %506 = shalt.err (!%p503_p1)
}
  0x23   :  { %20 = dma.hbm_to_vmem [thread:$0]  %s653_s0, 128, %s18_s27, [#allocation3]  }
  0x24   :  { %s507_s14 = scalar_lea.hbm %s655_s2, 128 }
  0x25   :  { %p508_p2 = scmp.ne.s32.totalorder %s655_s2, %s507_s14  ;;  %p511_p3 = scmp.lt.u32.totalorder %s507_s14, %s655_s2 }
  0x27   :  { %p513_p4 = pnand %p511_p3, %p508_p2 }
  0x29   :  { %516 = shalt.err (!%p513_p4)
}
  0x2a   :  { %s517_s19 = scalar_lea.vmem %s40_s29, 128  ;;  %p522_p6 = scmp.lt.s32.totalorder %s40_s29, %s40_s29 }
  0x2b   :  { %p518_p5 = scmp.ne.s32.totalorder %s40_s29, %s517_s19  ;;  %p523_p7 = scmp.lt.s32.totalorder %s517_s19, %s517_s19 }
  0x2d   :  { %p524_p8 = por %p523_p7, %p522_p6 }
  0x2f   :  { %p525_p9 = pnand %p524_p8, %p518_p5 }
  0x31   :  { %528 = shalt.err (!%p525_p9)
}
  0x32   :  { %42 = dma.hbm_to_vmem [thread:$0]  %s655_s2, 128, %s40_s29, [#allocation6]  }
  0x33   :  { %551 = dma.done.wait [#allocation3], 128  }
  0x34   :  { %552 = vsyncadd [#allocation3], 4294967168 }
  0x35   :  { %553 = dma.done.wait [#allocation6], 2304  }
  0x36   :  { %554 = vsyncadd [#allocation6], 4294964992  ;;  %v562_v0 = vmov 0.0   ;;  %vm563_vm0 = vmmov 0   ;;  %v446_v1 = vld [vmem:[#allocation5] sm:$0xff]   ;;  %v53_v2 = vld [vmem:[#allocation2] sm:$0xff] }
  0x37   :  { %392 = vmatprep.subr.bf16.mxu0 %v562_v0  ;;  %394 = vmatprep.mubr.msk.bf16.mxu0 %vm563_vm0, %v562_v0  ;;  %v54_v3 = vpack.c.bf16 %v53_v2, %v53_v2  ;;  %vm102_vm1 = vcmask 130048   ;;  %v447_v4 = vld [vmem:[#allocation5 + $0x8] sm:$0xff]   ;;  %v448_v5 = vld [vmem:[#allocation5 + $0x10] sm:$0xff]   ;;  %v449_v6 = vld [vmem:[#allocation5 + $0x18] sm:$0xff]   ;;  %s564_s2 = smov [#allocation8]  }
  0x38   :  { %398 = vmatprep.subr.bf16.mxu1 %v562_v0  ;;  %414 = vmatprep.mubr.msk.bf16.mxu1 %vm563_vm0, %v562_v0  ;;  %v450_v7 = vld [vmem:[#allocation5 + $0x20] sm:$0xff]   ;;  %v451_v8 = vld [vmem:[#allocation5 + $0x28] sm:$0xff]   ;;  %v452_v9 = vld [vmem:[#allocation5 + $0x30] sm:$0xff]   ;;  %s341_s21 = sshll.u32 %s564_s2, 4  ;;  %s342_s21 = int_to_ptr.vmem [resolvable:$true] %s341_s21 }
  0x39   :  { %393 = vmatpush3.bf16.msra.mxu0 %v446_v1  ;;  %399 = vmatpush3.bf16.msra.mxu1 %v447_v4  ;;  %v453_v10 = vld [vmem:[#allocation5 + $0x38] sm:$0xff]   ;;  %v454_v11 = vld [vmem:[#allocation5 + $0x40] sm:$0xff]   ;;  %v455_v12 = vld [vmem:[#allocation5 + $0x48] sm:$0xff]   ;;  %s529_s22 = scalar_lea.vmem %s342_s21, 128  ;;  %p534_p11 = scmp.lt.s32.totalorder %s342_s21, %s342_s21 }
  0x3a   :  { %418 = vmatprep.subr.bf16.mxu0 %v562_v0  ;;  %400 = vmatprep.subr.bf16.mxu1 %v562_v0  ;;  %v456_v13 = vld [vmem:[#allocation5 + $0x50] sm:$0xff]   ;;  %v457_v14 = vld [vmem:[#allocation5 + $0x58] sm:$0xff]   ;;  %v458_v15 = vld [vmem:[#allocation5 + $0x60] sm:$0xff]   ;;  %p530_p10 = scmp.ne.s32.totalorder %s342_s21, %s529_s22  ;;  %p535_p12 = scmp.lt.s32.totalorder %s529_s22, %s529_s22 }
  0x3b   :  { %v459_v16 = vld [vmem:[#allocation5 + $0x68] sm:$0xff]   ;;  %v460_v17 = vld [vmem:[#allocation5 + $0x70] sm:$0xff]   ;;  %v461_v26 = vld [vmem:[#allocation5 + $0x78] sm:$0xff]  }
  0x3c   :  { %395 = vmatmul.mubr.msk.bf16.vlgmr.msra.gmra.mrb[0].mxu0 %vm102_vm1, %v54_v3  ;;  %v351_v18 = vld [vmem:[#allocation7] ss:$0 sm:$0xff]  ;;  %v462_v27 = vld [vmem:[#allocation5 + $0x80] sm:$0xff]   ;;  %v354_v28 = vld [vmem:[#allocation7 + $0x1] ss:$0 sm:$0xff]  ;;  %p536_p13 = por %p535_p12, %p534_p11 }
  0x3d   :  { %434 = vmatprep.mubr.msk.bf16.mxu0 %vm563_vm0, %v562_v0  ;;  %401 = vmatpush3.bf16.msra.mxu1 %v448_v5  ;;  %v363_v36 = vld [vmem:[#allocation7 + $0x2] ss:$0 sm:$0xff] }
  0x3e   :  { %402 = vmatprep.subr.bf16.mxu1 %v562_v0  ;;  %419 = vmatpush3.bf16.msra.mxu0 %v455_v12  ;;  %p537_p0 = pnand %p536_p13, %p530_p10 }
  0x3f   :  { %420 = vmatprep.subr.bf16.mxu0 %v562_v0 }
  0x41   :  { %403 = vmatpush3.bf16.msra.mxu1 %v449_v6 }
  0x42   :  { %404 = vmatprep.subr.bf16.mxu1 %v562_v0  ;;  %421 = vmatpush3.bf16.msra.mxu0 %v456_v13 }
  0x43   :  { %422 = vmatprep.subr.bf16.mxu0 %v562_v0 }
  0x45   :  { %405 = vmatpush3.bf16.msra.mxu1 %v450_v7 }
  0x46   :  { %406 = vmatprep.subr.bf16.mxu1 %v562_v0  ;;  %423 = vmatpush3.bf16.msra.mxu0 %v457_v14 }
  0x47   :  { %424 = vmatprep.subr.bf16.mxu0 %v562_v0 }
  0x49   :  { %407 = vmatpush3.bf16.msra.mxu1 %v451_v8 }
  0x4a   :  { %408 = vmatprep.subr.bf16.mxu1 %v562_v0  ;;  %425 = vmatpush3.bf16.msra.mxu0 %v458_v15 }
  0x4b   :  { %426 = vmatprep.subr.bf16.mxu0 %v562_v0 }
  0x4d   :  { %409 = vmatpush3.bf16.msra.mxu1 %v452_v9 }
  0x4e   :  { %410 = vmatprep.subr.bf16.mxu1 %v562_v0  ;;  %427 = vmatpush3.bf16.msra.mxu0 %v459_v16 }
  0x4f   :  { %428 = vmatprep.subr.bf16.mxu0 %v562_v0 }
  0x51   :  { %411 = vmatpush3.bf16.msra.mxu1 %v453_v10 }
  0x52   :  { %412 = vmatprep.subr.bf16.mxu1 %v562_v0  ;;  %429 = vmatpush3.bf16.msra.mxu0 %v460_v17 }
  0x53   :  { %430 = vmatprep.subr.bf16.mxu0 %v562_v0 }
  0x55   :  { %413 = vmatpush3.bf16.msra.mxu1 %v454_v11 }
  0x56   :  { %431 = vmatpush3.bf16.msra.mxu0 %v461_v26 }
  0x57   :  { %432 = vmatprep.subr.bf16.mxu0 %v562_v0 }
  0x5a   :  { %433 = vmatpush3.bf16.msra.mxu0 %v462_v27 }
 0x10f   :  { %v140_v19 = vpop.f32.mrb[0].mxu0 }
 0x110   :  { %v141_v20 = vadd.f32 %v351_v18, %v140_v19  ;;  %v396_v21 = vpop.f32.mrb[1].mxu0 }
 0x111   :  { %v143_v22 = vpop.f32.mrb[2].mxu0 }
 0x112   :  { %v146_v23 = vmax.f32 %v141_v20, 0.0  ;;  %v397_v24 = vpop.f32.mrb[3].mxu0 }
 0x114   :  { %v147_v25 = vpack.c.bf16 %v146_v23, %v146_v23 }
 0x116   :  { %415 = vmatmul.mubr.bf16.vlgmr.msra.gmra.mrb[0].mxu1 %v147_v25 }
 0x1e9   :  { %v234_v29 = vpop.f32.mrb[0].mxu1 }
 0x1ea   :  { %v235_v30 = vadd.f32 %v354_v28, %v234_v29  ;;  %v416_v31 = vpop.f32.mrb[1].mxu1 }
 0x1eb   :  { %v237_v32 = vpop.f32.mrb[2].mxu1 }
 0x1ec   :  { %v240_v33 = vmax.f32 %v235_v30, 0.0  ;;  %v417_v34 = vpop.f32.mrb[3].mxu1 }
 0x1ee   :  { %v241_v35 = vpack.c.bf16 %v240_v33, %v240_v33 }
 0x1f0   :  { %435 = vmatmul.mubr.bf16.vlgmr.msra.gmra.mrb[4].mxu0 %v241_v35 }
 0x2c3   :  { %v328_v37 = vpop.f32.mrb[4].mxu0 }
 0x2c4   :  { %v329_v38 = vadd.f32 %v363_v36, %v328_v37  ;;  %v436_v39 = vpop.f32.mrb[5].mxu0 }
 0x2c5   :  { %v331_v40 = vpop.f32.mrb[6].mxu0 }
 0x2c6   :  { %334 = vst [vmem:[#allocation8] sm:$0xff] %v329_v38  ;;  %v437_v41 = vpop.f32.mrb[7].mxu0 }
 0x2c7   :  { %540 = shalt.err (!%p537_p0)
}
 0x2c8   :  { %s541_s25 = scalar_lea.hbm %s656_s3, 128 }
 0x2c9   :  { %p542_p1 = scmp.ne.s32.totalorder %s656_s3, %s541_s25  ;;  %p545_p2 = scmp.lt.u32.totalorder %s541_s25, %s656_s3 }
 0x2cb   :  { %p547_p3 = pnand %p545_p2, %p542_p1 }
 0x2cd   :  { %550 = shalt.err (!%p547_p3)
}
 0x2ce   :  { %344 = dma.vmem_to_hbm [thread:$0]  %s342_s21, 128, %s656_s3, [#allocation4]  }
 0x2cf   :  { %555 = dma.done.wait [#allocation4], 128  }
 0x2d0   :  { %556 = vsyncadd [#allocation4], 4294967168 }
 0x2d1   :  { %348 = vsyncpa [#allocation3], 1 }
 0x2d2   :  { %349 = vsyncpa [#allocation6], 1 }
 0x2d3   :  { %350 = vsyncpa [#allocation4], 1 }

</bundles_post_ra>
